<compile_context>
chip_gen: v5e
topology: v5e:2x2
jax: 0.10.0
libtpu: 0.0.40
codegen_flags: <defaults>
</compile_context>

<pallas_src>
import functools
import math

import jax
import jax.numpy as jnp
from jax import lax
from jax.experimental import pallas as pl
from jax.experimental.pallas import tpu as pltpu


_INV_SQRT2 = 1.0 / math.sqrt(2.0)
_MIB = 2 ** 20


def _round_up(a, b):
    return ((a + b - 1) // b) * b


def _cdiv(a, b):
    return (a + b - 1) // b


def _gelu(x, approximate):
    if approximate:
        # tanh approximation -> EUP slot (cheaper once matmuls are compute-bound)
        return jax.nn.gelu(x, approximate=True)
    # PyTorch nn.GELU() default: exact erf formulation (evaluated in f32).
    return 0.5 * x * (1.0 + lax.erf(x * _INV_SQRT2))


def _vmem_capacity_bytes():
    """Physical VMEM per core; conservative 64 MiB (v7x) fallback."""
    try:
        info = pltpu.get_tpu_info()
        cap = getattr(info, "vmem_capacity_bytes", None)
        if cap:
            return int(cap)
    except Exception:
        pass
    return 64 * _MIB


def _vmem_limit(need, physical):
    # Headroom above the estimate, but never the whole physical VMEM
    # (compiler-internal scratch / double buffers need room, esp. on v7x).
    return int(min(max(int(1.5 * need), 32 * _MIB), int(0.9 * physical)))


# --------------------------------------------------------------------------- #
# Kernels
# --------------------------------------------------------------------------- #


def _mlp_resident_kernel(x_ref, w1_ref, b1_ref, w2_ref, b2_ref, o_ref, *,
                         approximate):
    # Weights are VMEM-resident (constant index_map -> DMA'd once, never
    # re-fetched across M tiles).  fc1 -> GELU -> fc2 in one pass.
    # x_ref:  [tile_m, d_in]   (compute dtype)
    # w1_ref: [d_in,  d_hid]   (compute dtype)   b1_ref: [1, d_hid] (f32)
    # w2_ref: [d_hid, d_out]   (compute dtype)   b2_ref: [1, d_out] (f32)
    h = jnp.dot(x_ref[...], w1_ref[...], preferred_element_type=jnp.float32)
    h = _gelu(h + b1_ref[...], approximate)
    out = jnp.dot(h.astype(w2_ref.dtype), w2_ref[...],
                  preferred_element_type=jnp.float32)
    o_ref[...] = (out + b2_ref[...]).astype(o_ref.dtype)


def _mlp_chunked_kernel(x_ref, w1_ref, b1_ref, w2_ref, b2_ref, o_ref, acc_ref,
                        *, approximate):
    # Hidden dimension streamed in chunks on the trailing "arbitrary" grid axis.
    # acc_ref: [tile_m, d_out] f32 accumulator.
    k = pl.program_id(1)

    @pl.when(k == 0)
    def _init():
        # Fold b2 into the accumulator init (saves a [tile_m, d_out] epilogue add).
        acc_ref[...] = jnp.broadcast_to(b2_ref[...], acc_ref.shape)

    h = jnp.dot(x_ref[...], w1_ref[...], preferred_element_type=jnp.float32)
    h = _gelu(h + b1_ref[...], approximate)
    acc_ref[...] += jnp.dot(h.astype(w2_ref.dtype), w2_ref[...],
                            preferred_element_type=jnp.float32)

    @pl.when(k == pl.num_programs(1) - 1)
    def _finalize():
        o_ref[...] = acc_ref[...].astype(o_ref.dtype)


# --------------------------------------------------------------------------- #
# Wrapper
# --------------------------------------------------------------------------- #


def mlp_pallas(x, w1, b1, w2, b2, *, tile_m=None, tile_k=512,
               compute_dtype=None, approximate_gelu=False,
               weights_resident=None, interpret=False):
    """x: [..., d_in]; w1: [d_in, d_hid]; b1: [d_hid]; w2: [d_hid, d_out]; b2: [d_out].

    compute_dtype: optional (e.g. jnp.bfloat16) dtype for the MXU operands;
      accumulation/GELU/biases stay f32.  None keeps the storage dtype (exact
      semantic parity with the PyTorch module).
    weights_resident: None = auto (resident when w1/w2 fit the VMEM budget).
    """
    orig_shape = x.shape
    orig_dtype = x.dtype
    d_in = orig_shape[-1]
    d_hid = w1.shape[1]
    d_out = w2.shape[1]
    assert w1.shape[0] == d_in and w2.shape[0] == d_hid
    assert b1.shape == (d_hid,) and b2.shape == (d_out,)

    x2 = x.reshape(-1, d_in)
    n_tok = x2.shape[0]

    if compute_dtype is not None:
        x2 = x2.astype(compute_dtype)
        w1 = w1.astype(compute_dtype)
        w2 = w2.astype(compute_dtype)

    itm_x = x2.dtype.itemsize
    itm_w = w1.dtype.itemsize
    itm_o = jnp.dtype(orig_dtype).itemsize

    vmem_physical = _vmem_capacity_bytes()
    vmem_budget = int(0.75 * vmem_physical)

    # ---- token (M) tile -----------------------------------------------------
    if tile_m is None:
        # 128 MiB parts (v5e/v6e) can afford ~1024-row tiles; 64 MiB (v7x) ~512.
        tile_m = 1024 if vmem_physical >= 96 * _MIB else 512
    tm = min(tile_m, _round_up(max(n_tok, 1), 16))  # 16 keeps bf16 sublane packing legal
    # Guarantee >=2 M tiles when there is enough work so v7x can use both TCs.
    if n_tok > 256 and _cdiv(n_tok, tm) < 2:
        tm = _round_up(_cdiv(n_tok, 2), 16)

    # ---- path selection ------------------------------------------------------
    def resident_need(t):
        return (2 * t * d_in * itm_x                # double-buffered x tiles
                + 2 * d_in * d_hid * itm_w          # w1 (budget 2x conservatively)
                + 2 * d_hid * d_out * itm_w         # w2
                + 2 * (d_hid + d_out) * 4           # f32 biases
                + 2 * t * d_out * itm_o             # output tiles
                + t * d_hid * (4 + itm_w)           # f32 GELU intermediate + cast copy
                + t * d_out * 4)                    # f32 pre-cast fc2 result

    if weights_resident is None:
        weights_resident = resident_need(16) <= vmem_budget

    kernel_kwargs = dict(approximate=approximate_gelu)

    if weights_resident:
        # Shrink tile_m until the full estimate fits the budget.
        while tm > 16 and resident_need(tm) > vmem_budget:
            tm = max(16, _round_up(tm // 2, 16))

        pad_m = (-n_tok) % tm
        if pad_m:
            x2 = jnp.pad(x2, ((0, pad_m), (0, 0)))
        n_pad = n_tok + pad_m
        grid = (n_pad // tm,)

        b1_2d = b1.reshape(1, d_hid).astype(jnp.float32)
        b2_2d = b2.reshape(1, d_out).astype(jnp.float32)

        vmem_need = resident_need(tm)
        flops = 2 * n_pad * d_hid * (d_in + d_out)
        bytes_accessed = (x2.size * itm_x
                          + w1.size * itm_w + w2.size * itm_w   # streamed once
                          + (d_hid + d_out) * 4
                          + n_pad * d_out * itm_o)
        cost = pl.CostEstimate(flops=int(flops),
                               transcendentals=int(n_pad * d_hid),
                               bytes_accessed=int(bytes_accessed))

        out = pl.pallas_call(
            functools.partial(_mlp_resident_kernel, **kernel_kwargs),
            out_shape=jax.ShapeDtypeStruct((n_pad, d_out), orig_dtype),
            grid_spec=pltpu.PrefetchScalarGridSpec(
                num_scalar_prefetch=0,
                grid=grid,
                in_specs=[
                    pl.BlockSpec((tm, d_in), lambda i: (i, 0)),
                    pl.BlockSpec((d_in, d_hid), lambda i: (0, 0)),   # resident
                    pl.BlockSpec((1, d_hid), lambda i: (0, 0)),      # resident
                    pl.BlockSpec((d_hid, d_out), lambda i: (0, 0)),  # resident
                    pl.BlockSpec((1, d_out), lambda i: (0, 0)),      # resident
                ],
                out_specs=pl.BlockSpec((tm, d_out), lambda i: (i, 0)),
            ),
            compiler_params=pltpu.CompilerParams(
                dimension_semantics=("parallel",),
                vmem_limit_bytes=_vmem_limit(vmem_need, vmem_physical)),
            cost_estimate=cost,
            interpret=interpret,
        )(x2, w1, b1_2d, w2, b2_2d)

    else:
        # ---- hidden (reduction) chunking ------------------------------------
        if d_hid <= tile_k:
            tk = d_hid
        else:
            assert tile_k % 128 == 0, "tile_k must be a 128-multiple when chunking d_hid"
            tk = tile_k

        def chunked_need(t):
            return (2 * t * d_in * itm_x
                    + 2 * d_in * tk * itm_w
                    + 2 * tk * d_out * itm_w
                    + 2 * (tk + d_out) * 4
                    + 2 * t * d_out * itm_o
                    + t * d_out * 4                 # f32 accumulator scratch
                    + t * tk * (4 + itm_w))         # f32 GELU intermediate + cast copy

        while tm > 16 and chunked_need(tm) > vmem_budget:
            tm = max(16, _round_up(tm // 2, 16))

        pad_m = (-n_tok) % tm
        if pad_m:
            x2 = jnp.pad(x2, ((0, pad_m), (0, 0)))
        n_pad = n_tok + pad_m

        hid_pad = _round_up(d_hid, tk)
        if hid_pad != d_hid:
            # Exact: b1 and the extra w2 rows are zero-padded, gelu(0+0)=0
            # contributes nothing to the fc2 accumulation.
            w1 = jnp.pad(w1, ((0, 0), (0, hid_pad - d_hid)))
            b1 = jnp.pad(b1, ((0, hid_pad - d_hid),))
            w2 = jnp.pad(w2, ((0, hid_pad - d_hid), (0, 0)))

        b1_2d = b1.reshape(1, hid_pad).astype(jnp.float32)
        b2_2d = b2.reshape(1, d_out).astype(jnp.float32)

        grid = (n_pad // tm, hid_pad // tk)
        num_m = grid[0]

        vmem_need = chunked_need(tm)
        flops = 2 * n_pad * hid_pad * (d_in + d_out)
        # Weights are re-streamed once per M tile while the hidden axis is chunked.
        bytes_accessed = (x2.size * itm_x
                          + num_m * (w1.size * itm_w + w2.size * itm_w)
                          + (hid_pad + d_out) * 4
                          + n_pad * d_out * itm_o)
        cost = pl.CostEstimate(flops=int(flops),
                               transcendentals=int(n_pad * hid_pad),
                               bytes_accessed=int(bytes_accessed))

        out = pl.pallas_call(
            functools.partial(_mlp_chunked_kernel, **kernel_kwargs),
            out_shape=jax.ShapeDtypeStruct((n_pad, d_out), orig_dtype),
            grid_spec=pltpu.PrefetchScalarGridSpec(
                num_scalar_prefetch=0,
                grid=grid,
                in_specs=[
                    pl.BlockSpec((tm, d_in), lambda i, k: (i, 0)),
                    pl.BlockSpec((d_in, tk), lambda i, k: (0, k)),
                    pl.BlockSpec((1, tk), lambda i, k: (0, k)),
                    pl.BlockSpec((tk, d_out), lambda i, k: (k, 0)),
                    pl.BlockSpec((1, d_out), lambda i, k: (0, 0)),
                ],
                out_specs=pl.BlockSpec((tm, d_out), lambda i, k: (i, 0)),
                scratch_shapes=[pltpu.VMEM((tm, d_out), jnp.float32)],
            ),
            compiler_params=pltpu.CompilerParams(
                dimension_semantics=("parallel", "arbitrary"),
                vmem_limit_bytes=_vmem_limit(vmem_need, vmem_physical)),
            cost_estimate=cost,
            interpret=interpret,
        )(x2, w1, b1_2d, w2, b2_2d)

    if pad_m:
        out = out[:n_tok]
    return out.reshape(orig_shape[:-1] + (d_out,))


# --------------------------------------------------------------------------- #
# Reference / init helpers
# --------------------------------------------------------------------------- #


def init_mlp_params(key, in_features, hidden_features, out_features, dtype=jnp.float32):
    """Deterministic init mimicking nn.Linear's uniform ranges.

    Weights stored as [in, out] (transpose of PyTorch's [out, in]) so the
    kernel computes x @ W directly.
    """
    k1, k2, k3, k4 = jax.random.split(key, 4)
    lim1 = 1.0 / math.sqrt(in_features)
    lim2 = 1.0 / math.sqrt(hidden_features)
    w1 = jax.random.uniform(k1, (in_features, hidden_features), dtype, -lim1, lim1)
    b1 = jax.random.uniform(k2, (hidden_features,), dtype, -lim1, lim1)
    w2 = jax.random.uniform(k3, (hidden_features, out_features), dtype, -lim2, lim2)
    b2 = jax.random.uniform(k4, (out_features,), dtype, -lim2, lim2)
    return w1, b1, w2, b2


def mlp_reference(x, w1, b1, w2, b2):
    h = x @ w1 + b1
    h = 0.5 * h * (1.0 + lax.erf(h * _INV_SQRT2))
    return h @ w2 + b2


if __name__ == "__main__":
    key = jax.random.PRNGKey(0)
    kx, kp, kx2, kp2 = jax.random.split(key, 4)

    # 1) Small shapes consistent with the module, exact f32 path (semantic
    #    parity with nn.Linear + nn.GELU): x (batch=2, seq=8, in=16), hid=32.
    in_f, hid_f, out_f = 16, 32, 16
    x = jax.random.normal(kx, (2, 8, in_f), dtype=jnp.float32)
    w1, b1, w2, b2 = init_mlp_params(kp, in_f, hid_f, out_f)

    out = jax.block_until_ready(mlp_pallas(x, w1, b1, w2, b2))
    ref = mlp_reference(x, w1, b1, w2, b2)
    assert out.shape == ref.shape
    assert jnp.allclose(out, ref, atol=1e-4, rtol=1e-4), "mismatch vs reference (small)"

    # 2) Lane-aligned config on the resident-weight path with bf16 MXU compute
    #    (f32 callers, f32 accumulation): 384 tokens, d_in=128, d_hid=1024.
    in_f2, hid_f2, out_f2 = 128, 1024, 128
    x2 = jax.random.normal(kx2, (4, 96, in_f2), dtype=jnp.float32)
    w1b, b1b, w2b, b2b = init_mlp_params(kp2, in_f2, hid_f2, out_f2)
    out2 = jax.block_until_ready(
        mlp_pallas(x2, w1b, b1b, w2b, b2b, compute_dtype=jnp.bfloat16))
    ref2 = mlp_reference(x2, w1b, b1b, w2b, b2b)
    assert out2.shape == ref2.shape
    assert jnp.allclose(out2, ref2, atol=3e-2, rtol=3e-2), "mismatch (resident/bf16)"

    # 3) Same problem forced onto the hidden-chunk streaming path (f32),
    #    exercising the accumulator + b2-folded init/finalize.
    out3 = jax.block_until_ready(
        mlp_pallas(x2, w1b, b1b, w2b, b2b, weights_resident=False,
                   tile_m=128, tile_k=256))
    assert out3.shape == ref2.shape
    assert jnp.allclose(out3, ref2, atol=2e-2, rtol=2e-2), "mismatch (chunked)"

    print("KERNEL_OK")
</pallas_src>

<mosaic_0001>
module attributes {stable_mosaic.version = 11 : i64} {
  func.func @_mlp_resident_kernel(%arg0: i32, %arg1: memref<16x16xf32, #tpu.memory_space<vmem>>, %arg2: memref<16x32xf32, #tpu.memory_space<vmem>>, %arg3: memref<1x32xf32, #tpu.memory_space<vmem>>, %arg4: memref<32x16xf32, #tpu.memory_space<vmem>>, %arg5: memref<1x16xf32, #tpu.memory_space<vmem>>, %arg6: memref<16x16xf32, #tpu.memory_space<vmem>>) attributes {dimension_semantics = [#tpu.dimension_semantics<parallel>], iteration_bounds = array<i64: 1>, scalar_prefetch = 0 : i64, scratch_operands = 0 : i64, tpu.core_type = #tpu.core_type<tc>, window_params = [{transform_indices = @transform_0, window_bounds = array<i64: 16, 16>}, {pipeline_mode = #tpu.pipeline_mode<synchronous>, transform_indices = @transform_1, window_bounds = array<i64: 16, 32>}, {pipeline_mode = #tpu.pipeline_mode<synchronous>, transform_indices = @transform_2, window_bounds = array<i64: 1, 32>}, {pipeline_mode = #tpu.pipeline_mode<synchronous>, transform_indices = @transform_3, window_bounds = array<i64: 32, 16>}, {pipeline_mode = #tpu.pipeline_mode<synchronous>, transform_indices = @transform_4, window_bounds = array<i64: 1, 16>}, {transform_indices = @transform_5, window_bounds = array<i64: 16, 16>}]} {
    %c0 = arith.constant 0 : index
    %c0_0 = arith.constant 0 : index
    %0 = vector.load %arg1[%c0, %c0_0] : memref<16x16xf32, #tpu.memory_space<vmem>>, vector<16x16xf32>
    %c0_1 = arith.constant 0 : index
    %c0_2 = arith.constant 0 : index
    %1 = vector.load %arg2[%c0_1, %c0_2] : memref<16x32xf32, #tpu.memory_space<vmem>>, vector<16x32xf32>
    %cst = arith.constant dense<0.000000e+00> : vector<16x32xf32>
    %2 = tpu.matmul %0, %1, %cst {dimension_numbers = #tpu.dot_dimension_numbers<[1], [0], [0], [1], [0, 0, 1, 1], [], []>} : vector<16x16xf32>, vector<16x32xf32>, vector<16x32xf32> -> vector<16x32xf32>
    %c0_3 = arith.constant 0 : index
    %c0_4 = arith.constant 0 : index
    %3 = vector.load %arg3[%c0_3, %c0_4] : memref<1x32xf32, #tpu.memory_space<vmem>>, vector<1x32xf32>
    %4 = vector.broadcast %3 : vector<1x32xf32> to vector<16x32xf32>
    %5 = arith.addf %2, %4 : vector<16x32xf32>
    %cst_5 = arith.constant 5.000000e-01 : f32
    %6 = vector.broadcast %cst_5 : f32 to vector<16x32xf32>
    %7 = arith.mulf %6, %5 : vector<16x32xf32>
    %cst_6 = arith.constant 0.707106769 : f32
    %8 = vector.broadcast %cst_6 : f32 to vector<16x32xf32>
    %9 = arith.mulf %5, %8 : vector<16x32xf32>
    %10 = math.erf %9 : vector<16x32xf32>
    %cst_7 = arith.constant 1.000000e+00 : f32
    %11 = vector.broadcast %cst_7 : f32 to vector<16x32xf32>
    %12 = arith.addf %11, %10 : vector<16x32xf32>
    %13 = arith.mulf %7, %12 : vector<16x32xf32>
    %c0_8 = arith.constant 0 : index
    %c0_9 = arith.constant 0 : index
    %14 = vector.load %arg4[%c0_8, %c0_9] : memref<32x16xf32, #tpu.memory_space<vmem>>, vector<32x16xf32>
    %cst_10 = arith.constant dense<0.000000e+00> : vector<16x16xf32>
    %15 = tpu.matmul %13, %14, %cst_10 {dimension_numbers = #tpu.dot_dimension_numbers<[1], [0], [0], [1], [0, 0, 1, 1], [], []>} : vector<16x32xf32>, vector<32x16xf32>, vector<16x16xf32> -> vector<16x16xf32>
    %c0_11 = arith.constant 0 : index
    %c0_12 = arith.constant 0 : index
    %16 = vector.load %arg5[%c0_11, %c0_12] : memref<1x16xf32, #tpu.memory_space<vmem>>, vector<1x16xf32>
    %17 = vector.broadcast %16 : vector<1x16xf32> to vector<16x16xf32>
    %18 = arith.addf %15, %17 : vector<16x16xf32>
    %c0_13 = arith.constant 0 : index
    %c0_14 = arith.constant 0 : index
    %19 = vector.load %arg6[%c0_13, %c0_14] : memref<16x16xf32, #tpu.memory_space<vmem>>, vector<16x16xf32>
    tpu.vector_store %arg6[%c0_13, %c0_14], %18 {strides = array<i32>} : memref<16x16xf32, #tpu.memory_space<vmem>>, vector<16x16xf32>,
    return
  }
  func.func @transform_0(%arg0: i32) -> (i32, i32) {
    %c0_i32 = arith.constant 0 : i32
    %c0_i32_0 = arith.constant 0 : i32
    return %arg0, %c0_i32 : i32, i32
  }
  func.func @transform_1(%arg0: i32) -> (i32, i32) {
    %c0_i32 = arith.constant 0 : i32
    %c0_i32_0 = arith.constant 0 : i32
    %c0_i32_1 = arith.constant 0 : i32
    return %c0_i32, %c0_i32_0 : i32, i32
  }
  func.func @transform_2(%arg0: i32) -> (i32, i32) {
    %c0_i32 = arith.constant 0 : i32
    %c0_i32_0 = arith.constant 0 : i32
    %c0_i32_1 = arith.constant 0 : i32
    return %c0_i32, %c0_i32_0 : i32, i32
  }
  func.func @transform_3(%arg0: i32) -> (i32, i32) {
    %c0_i32 = arith.constant 0 : i32
    %c0_i32_0 = arith.constant 0 : i32
    %c0_i32_1 = arith.constant 0 : i32
    return %c0_i32, %c0_i32_0 : i32, i32
  }
  func.func @transform_4(%arg0: i32) -> (i32, i32) {
    %c0_i32 = arith.constant 0 : i32
    %c0_i32_0 = arith.constant 0 : i32
    %c0_i32_1 = arith.constant 0 : i32
    return %c0_i32, %c0_i32_0 : i32, i32
  }
  func.func @transform_5(%arg0: i32) -> (i32, i32) {
    %c0_i32 = arith.constant 0 : i32
    %c0_i32_0 = arith.constant 0 : i32
    return %arg0, %c0_i32 : i32, i32
  }
}

</mosaic_0001>

<bundles_post_ra>
// kernel: tpu_custom_call.1
= control target key start
LH: loop header
LB: loop body
LE: loop exit
PB: predicated region body
PF: predicated region fallthrough
CT: control target
= control target key end

     0   :  { %vm29_vm0 = vcmask 130048   ;;  %s340_s0 = inlined_call_operand.vmem [shape: f32[16,16], index: 0, kind: input, shape index: {}]   ;;  %s341_s1 = inlined_call_operand.vmem [shape: f32[16,32], index: 1, kind: input, shape index: {}]   ;;  %s342_s2 = inlined_call_operand.vmem [shape: f32[1,32], index: 2, kind: input, shape index: {}]   ;;  %s343_s3 = inlined_call_operand.vmem [shape: f32[32,16], index: 3, kind: input, shape index: {}]   ;;  %s344_s4 = inlined_call_operand.vmem [shape: f32[1,16], index: 4, kind: input, shape index: {}]   ;;  %s345_s5 = inlined_call_operand.hbm [shape: f32[16,16], index: 5, kind: output, shape index: {}]  }
   0x1   :  { %v24_v0 = vld [vmem:[%s341_s1 + $0x8] sm:$0xff]  ;;  %v23_v1 = vld [vmem:[%s341_s1] sm:$0xff] }
   0x2   :  { %50 = vmatpush.msra.mxu0 %v24_v0  ;;  %211 = vmatpush.msra.mxu3 %v24_v0  ;;  %v21_v2 = vld [vmem:[%s340_s0] sm:$0xff]  ;;  %v22_v3 = vld [vmem:[%s340_s0 + $0x8] sm:$0xff] }
   0x3   :  { %10 = vsyncpa [#allocation3], 0  ;;  %v220_v4 = vld [vmem:[%s342_s2] ss:$0 sm:$0xff]  ;;  %v150_v25 = vld [vmem:[%s343_s3 + $0x18] sm:$0xff]  ;;  %vm155_vm9 = vcmask 261120  }
   0x4   :  { %51 = vmatpush.msra.mxu0 %v23_v1  ;;  %212 = vmatpush.msra.mxu3 %v23_v1  ;;  %v149_v29 = vld [vmem:[%s343_s3 + $0x10] sm:$0xff]  ;;  %v148_v34 = vld [vmem:[%s343_s3 + $0x8] sm:$0xff]  ;;  %v147_v36 = vld [vmem:[%s343_s3] sm:$0xff]  ;;  %s252_s9 = smov [#allocation2]   ;;  %s193_s13 = sshll.u32 %s345_s5, 4  ;;  %s194_s13 = int_to_ptr.hbm [resolvable:$true] %s193_s13 }
   0x5   :  { %205 = vmatmul.msk.f32.vlgmr.msra.gmra.mxu0 %vm29_vm0, %v21_v2  ;;  %206 = vmatmul.msk.f32.vlgmr.msra.gmra.mxu3 %vm29_vm0, %v22_v3  ;;  %s191_s10 = sshll.u32 %s252_s9, 4  ;;  %s253_s14 = smov 128   ;;  %s192_s10 = int_to_ptr.vmem [resolvable:$true] %s191_s10 }
   0x6   :  { %174 = vmatpush.msra.mxu1 %v150_v25  ;;  %213 = vmatpush.msra.mxu2 %v150_v25  ;;  %s254_s15 = smov 8  }
   0x8   :  { %175 = vmatpush.msra.mxu1 %v149_v29  ;;  %214 = vmatpush.msra.mxu2 %v149_v29 }
   0xa   :  { %176 = vmatpush.msra.mxu1 %v148_v34  ;;  %215 = vmatpush.msra.mxu2 %v148_v34 }
   0xc   :  { %177 = vmatpush.msra.mxu1 %v147_v36  ;;  %216 = vmatpush.msra.mxu2 %v147_v36 }
  0x82   :  { %v53_v5 = vpop.f32.mrf.mxu0 }
  0x83   :  { %v302_v6 = vadd.f32 %v220_v4, %v53_v5 }
  0x85   :  { %v305_v7 = vmul.f32 0.70710677, %v302_v6 }
  0x87   :  { %v63_v8 = vmul.f32 %v305_v7, %v305_v7 }
  0x88   :  { %v56_v9 = vpop.f32.mrf.mxu3 }
  0x89   :  { %v64_v10 = vmin.f32 %v63_v8, 16.0  ;;  %v309_v11 = vadd.f32 %v220_v4, %v56_v9 }
  0x8b   :  { %v65_v12 = vmul.f32 2.1237322e-06, %v64_v10  ;;  %v76_v13 = vmul.f32 3.8918573e-05, %v64_v10  ;;  %v312_v14 = vmul.f32 0.70710677, %v309_v11 }
  0x8d   :  { %v66_v15 = vadd.f32 0.00028619796, %v65_v12  ;;  %v77_v16 = vadd.f32 0.001143296, %v76_v13  ;;  %v103_v17 = vmul.f32 %v312_v14, %v312_v14 }
  0x8f   :  { %v67_v18 = vmul.f32 %v66_v15, %v64_v10  ;;  %v78_v19 = vmul.f32 %v77_v16, %v64_v10  ;;  %v104_v20 = vmin.f32 %v103_v17, 16.0 }
  0x91   :  { %v68_v21 = vadd.f32 0.0036580483, %v67_v18  ;;  %v79_v22 = vadd.f32 0.014752088, %v78_v19  ;;  %v105_v23 = vmul.f32 2.1237322e-06, %v104_v20 }
  0x92   :  { %v116_v24 = vmul.f32 3.8918573e-05, %v104_v20  ;;  %v59_v19 = vmul.f32 0.5, %v302_v6  ;;  %v221_v6 = vld [vmem:[%s344_s4] ss:$0 sm:$0xff] }
  0x93   :  { %v80_v26 = vmul.f32 %v79_v22, %v64_v10  ;;  %v106_v27 = vadd.f32 0.00028619796, %v105_v23  ;;  %v69_v31 = vmul.f32 %v68_v21, %v64_v10 }
  0x94   :  { %v117_v28 = vadd.f32 0.001143296, %v116_v24 }
  0x95   :  { %v81_v30 = vadd.f32 0.112945676, %v80_v26  ;;  %v107_v32 = vmul.f32 %v106_v27, %v104_v20  ;;  %v70_v40 = vadd.f32 0.05243302, %v69_v31  ;;  %v60_v27 = vmul.f32 0.5, %v309_v11 }
  0x96   :  { %v118_v33 = vmul.f32 %v117_v28, %v104_v20 }
  0x97   :  { %v82_v35 = vmul.f32 %v81_v30, %v64_v10  ;;  %v108_v39 = vadd.f32 0.0036580483, %v107_v32  ;;  %v71_v46 = vmul.f32 %v70_v40, %v64_v10 }
  0x98   :  { %v119_v37 = vadd.f32 0.014752088, %v118_v33 }
  0x99   :  { %v83_v38 = vadd.f32 0.4994258, %v82_v35  ;;  %v109_v45 = vmul.f32 %v108_v39, %v104_v20  ;;  %v72_v50 = vadd.f32 0.18741608, %v71_v46 }
  0x9a   :  { %v120_v41 = vmul.f32 %v119_v37, %v104_v20 }
  0x9b   :  { %v84_v42 = vmul.f32 %v83_v38, %v64_v10  ;;  %v110_v49 = vadd.f32 0.05243302, %v109_v45  ;;  %v73_v55 = vmul.f32 %v72_v50, %v64_v10 }
  0x9c   :  { %v121_v43 = vadd.f32 0.112945676, %v120_v41 }
  0x9d   :  { %v85_v44 = vadd.f32 1.0, %v84_v42  ;;  %v111_v54 = vmul.f32 %v110_v49, %v104_v20  ;;  %v74_v60 = vadd.f32 1.1283791, %v73_v55 }
  0x9e   :  { %v122_v47 = vmul.f32 %v121_v43, %v104_v20 }
  0x9f   :  { %222 = vrcp.f32 %v85_v44  ;;  %v97_v58 = vand.u32 2147483648, %v85_v44  ;;  %v112_v59 = vadd.f32 0.18741608, %v111_v54  ;;  %v95_v62 = vand.u32 2147483647, %v85_v44 }
  0xa0   :  { %v123_v48 = vadd.f32 0.4994258, %v122_v47  ;;  %vm91_vm2 = vweird.f32 %v85_v44  ;;  %v75_v4 = vmul.f32 %v74_v60, %v305_v7 }
  0xa1   :  { %v98_v1 = vor.u32 1.1754944e-38, %v97_v58  ;;  %v113_v2 = vmul.f32 %v112_v59, %v104_v20  ;;  %vm96_vm4 = vcmp.eq.f32.partialorder %v95_v62, 8.507059e+37 }
  0xa2   :  { %v124_v51 = vmul.f32 %v123_v48, %v104_v20 }
  0xa3   :  { %v114_v13 = vadd.f32 1.1283791, %v113_v2 }
  0xa4   :  { %v125_v52 = vadd.f32 1.0, %v124_v51 }
  0xa5   :  { %v223_v53 = vpop.eup %222  ;;  %v115_v7 = vmul.f32 %v114_v13, %v312_v14 }
  0xa6   :  { %v87_v56 = vmul.f32 %v223_v53, %v85_v44  ;;  %224 = vrcp.f32 %v125_v52  ;;  %vm92_vm1 = vweird.f32 %v223_v53  ;;  %v137_v12 = vand.u32 2147483648, %v125_v52 }
  0xa7   :  { %vm93_vm3 = vmor %vm91_vm2, %vm92_vm1  ;;  %v135_v16 = vand.u32 2147483647, %v125_v52  ;;  %vm131_vm6 = vweird.f32 %v125_v52 }
  0xa8   :  { %v88_v57 = vsub.f32 1.0, %v87_v56  ;;  %v138_v20 = vor.u32 1.1754944e-38, %v137_v12 }
  0xa9   :  { %vm136_vm8 = vcmp.eq.f32.partialorder %v135_v16, 8.507059e+37 }
  0xaa   :  { %v89_v61 = vmul.f32 %v223_v53, %v88_v57 }
  0xac   :  { %v225_v63 = vpop.eup %224  ;;  %v90_v0 = vadd.f32 %v223_v53, %v89_v61 }
  0xad   :  { %v127_v3 = vmul.f32 %v225_v63, %v125_v52  ;;  %vm132_vm5 = vweird.f32 %v225_v63 }
  0xae   :  { %v94_v5 = vsel %vm93_vm3, %v223_v53, %v90_v0  ;;  %vm133_vm7 = vmor %vm131_vm6, %vm132_vm5 }
  0xaf   :  { %v99_v8 = vsel %vm96_vm4, %v98_v1, %v94_v5  ;;  %v128_v9 = vsub.f32 1.0, %v127_v3 }
  0xb0   :  { %v100_v10 = vmul.f32 %v99_v8, %v75_v4 }
  0xb1   :  { %v129_v15 = vmul.f32 %v225_v63, %v128_v9 }
  0xb2   :  { %v207_v17 = vclamps-f32 %v100_v10, 1.0 }
  0xb3   :  { %v130_v18 = vadd.f32 %v225_v63, %v129_v15 }
  0xb4   :  { %v143_v21 = vadd.f32 1.0, %v207_v17 }
  0xb5   :  { %v134_v22 = vsel %vm133_vm7, %v225_v63, %v130_v18 }
  0xb6   :  { %v139_v23 = vsel %vm136_vm8, %v138_v20, %v134_v22  ;;  %v145_v24 = vmul.f32 %v143_v21, %v59_v19 }
  0xb7   :  { %v140_v25 = vmul.f32 %v139_v23, %v115_v7 }
  0xb8   :  { %209 = vmatmul.msk.f32.vlgmr.msra.gmra.mxu1 %vm155_vm9, %v145_v24 }
  0xb9   :  { %v208_v26 = vclamps-f32 %v140_v25, 1.0 }
  0xbb   :  { %v144_v28 = vadd.f32 1.0, %v208_v26 }
  0xbd   :  { %v146_v29 = vmul.f32 %v144_v28, %v60_v27 }
  0xbf   :  { %210 = vmatmul.msk.f32.vlgmr.msra.gmra.mxu2 %vm155_vm9, %v146_v29 }
 0x135   :  { %v179_v30 = vpop.f32.mrf.mxu1 }
 0x136   :  { %v180_v31 = vadd.f32 %v221_v6, %v179_v30 }
 0x138   :  { %185 = vst.msk [vmem:[#allocation2] sm:$0xff] %vm29_vm0, %v180_v31 }
 0x142   :  { %v182_v14 = vpop.f32.mrf.mxu2 }
 0x143   :  { %v183_v11 = vadd.f32 %v221_v6, %v182_v14 }
 0x145   :  { %186 = vst.msk [vmem:[#allocation2 + $0x8] sm:$0xff] %vm29_vm0, %v183_v11 }
 0x146   :  { %199 = dma.vmem_to_hbm [thread:$0]  %s192_s10, 256, %s194_s13, [#allocation3], %s253_s14, %s253_s14, %s254_s15  }
 0x147   :  { %250 = dma.done.wait [#allocation3], 256  }
 0x148   :  { %251 = vsyncadd [#allocation3], 4294967040 }
 0x149   :  { %204 = vsyncpa [#allocation3], 1 }

</bundles_post_ra>
